<compile_context>
chip_gen: v6e
topology: v6e:2x2x1
jax: 0.10.0
libtpu: 0.0.40
codegen_flags: <defaults>
</compile_context>

<pallas_src>
import functools

import jax
import jax.numpy as jnp
from jax.experimental import pallas as pl
from jax.experimental.pallas import tpu as pltpu

EPS = 1e-5
LANE = 128
SUBLANE = 8


def _round_up(x, m):
    return (x + m - 1) // m * m


def _cdiv(a, b):
    return -(-a // b)


def _vmem_budgets():
    """(vmem_limit_bytes, tile_budget_bytes) derived from this chip generation."""
    phys = 64 * 1024 * 1024  # conservative default (v7x physical VMEM)
    try:
        info = pltpu.get_tpu_info()
        phys = int(getattr(info, "vmem_capacity_bytes", phys)) or phys
    except Exception:
        pass
    limit = min((phys * 3) // 4, 100 * 1024 * 1024)   # scoped-VMEM cap w/ headroom
    budget = (limit * 3) // 4                          # budget used for tile sizing
    return int(limit), int(budget)


_VMEM_LIMIT, _TILE_BUDGET = _vmem_budgets()


# ---------------------------------------------------------------------------
# Fused path: x resident in VMEM, stats + normalize + matmul in one kernel.
# ---------------------------------------------------------------------------
def _fused_kernel(x_ref, gamma_ref, beta_ref, w_ref, cls_ref, feat_ref, *, mm_dtype):
    x = x_ref[...].astype(jnp.float32)                        # [N, Dp]
    n = x.shape[0]
    mean = jnp.sum(x, axis=0, keepdims=True) / n              # [1, Dp]
    xc = x - mean
    var = jnp.sum(xc * xc, axis=0, keepdims=True) / n         # biased batch var
    inv_std = jax.lax.rsqrt(var + EPS)
    scale = inv_std * gamma_ref[...]                          # padded cols: gamma=0 -> 0
    feat = xc * scale + beta_ref[...]
    feat_ref[...] = feat.astype(feat_ref.dtype)
    cls_ref[...] = jnp.dot(
        feat.astype(mm_dtype), w_ref[...],
        preferred_element_type=jnp.float32).astype(cls_ref.dtype)


def _fused_fits(n, d_pad, c_pad, x_itemsize, w_itemsize, budget):
    est = n * d_pad * (x_itemsize + 4 + 4)        # x in, f32 temp, feat out
    est += n * c_pad * 4                          # cls out
    est += d_pad * c_pad * w_itemsize             # weight
    est += 16 * d_pad * 4                         # small per-feature vectors
    return 2 * est <= budget                      # 2x headroom for compiler temps


# ---------------------------------------------------------------------------
# Two-pass path, pass 1: per-feature batch sum / sum-of-squares, tiled over N.
# Leading grid axis = core (parallel, v7x uses both TensorCores), inner axis =
# N-tiles (arbitrary, revisited accumulator).  Ragged/duplicate tiles are
# masked by global row index, so no wrapper-side padding of x is needed.
# ---------------------------------------------------------------------------
def _stats_kernel(x_ref, sum_ref, sumsq_ref, *, n_total, tile_n, tiles_per_core):
    i = pl.program_id(1)

    @pl.when(i == 0)
    def _():
        sum_ref[...] = jnp.zeros_like(sum_ref)
        sumsq_ref[...] = jnp.zeros_like(sumsq_ref)

    t = pl.program_id(0) * tiles_per_core + i                 # logical tile index
    row0 = t * tile_n
    x = x_ref[...].astype(jnp.float32)                        # [tile_n, D]
    rows = row0 + jax.lax.broadcasted_iota(jnp.int32, x.shape, 0)
    x = jnp.where(rows < n_total, x, 0.0)                     # mask ragged / dup tiles
    sum_ref[...] += jnp.sum(x, axis=0, keepdims=True)
    sumsq_ref[...] += jnp.sum(x * x, axis=0, keepdims=True)


# ---------------------------------------------------------------------------
# Two-pass path, pass 2: feat = (x-mean)*scale+beta (VPU) and
# cls = x @ w_scaled + bias_row (MXU, BN affine pre-folded into the weights).
# ---------------------------------------------------------------------------
def _bn_linear_kernel(x_ref, mean_ref, scale_ref, beta_ref, w_ref, bias_ref,
                      cls_ref, feat_ref, *, mm_dtype):
    x = x_ref[...].astype(jnp.float32)                        # [TN, D]
    feat_ref[...] = ((x - mean_ref[...]) * scale_ref[...]
                     + beta_ref[...]).astype(feat_ref.dtype)
    cls = jnp.dot(x.astype(mm_dtype), w_ref[...],
                  preferred_element_type=jnp.float32) + bias_ref[...]
    cls_ref[...] = cls.astype(cls_ref.dtype)


def _choose_tile_n_stats(n, d, x_itemsize, budget):
    """Pass-1 tile: pure streaming, target ~4 MiB DMAs (double-buffered)."""
    target = min(4 * 1024 * 1024, budget // 4)
    tn = max(SUBLANE, (target // max(d * x_itemsize, 1)) // SUBLANE * SUBLANE)
    return min(tn, _round_up(n, SUBLANE))


def _choose_tile_n_main(n, d, c_pad, x_itemsize, w_itemsize, budget):
    """Pass-2 tile: count the double-buffered resident weight + per-row tiles."""
    fixed = 2 * d * c_pad * w_itemsize + 4 * 4 * (d + c_pad)      # W (2x) + small vecs
    per_row = 2 * (d * x_itemsize + d * 4 + c_pad * 4)            # x/feat/cls, 2x-buffered
    per_row += d * 4 + c_pad * 4                                  # in-kernel f32 temps
    avail = max(budget - fixed, per_row * SUBLANE)
    tn = max(SUBLANE, (avail // per_row) // SUBLANE * SUBLANE)
    tn = min(tn, 8192)
    return min(tn, _round_up(n, SUBLANE))


@functools.partial(jax.jit, static_argnames=("force_two_pass", "use_bf16_matmul"))
def classifier_forward(x, gamma, beta, w, *, force_two_pass=False,
                       use_bf16_matmul=False):
    """x: [N, D]; gamma/beta: [D] or [1, D]; w: [C, D] (PyTorch layout).

    Returns (cls_score [N, C] f32, feat_afterBN [N, D] f32)."""
    N, D = x.shape
    C = w.shape[0]
    mm_dtype = jnp.bfloat16 if use_bf16_matmul else jnp.float32
    mm_isz = jnp.dtype(mm_dtype).itemsize
    x_isz = jnp.dtype(x.dtype).itemsize

    gamma = jnp.reshape(gamma, (1, D)).astype(jnp.float32)
    beta = jnp.reshape(beta, (1, D)).astype(jnp.float32)
    C_pad = _round_up(C, LANE)

    # ---------------- fused single-pass path (x fits VMEM) ----------------
    D_pad = _round_up(D, LANE)
    if (not force_two_pass) and _fused_fits(N, D_pad, C_pad, x_isz, mm_isz,
                                            _TILE_BUDGET):
        x_p = x if D_pad == D else jnp.pad(x, ((0, 0), (0, D_pad - D)))
        g_p = jnp.zeros((1, D_pad), jnp.float32).at[:, :D].set(gamma)
        b_p = jnp.zeros((1, D_pad), jnp.float32).at[:, :D].set(beta)
        w_p = jnp.zeros((D_pad, C_pad), mm_dtype).at[:D, :C].set(
            w.T.astype(mm_dtype))

        cls_p, feat_p = pl.pallas_call(
            functools.partial(_fused_kernel, mm_dtype=mm_dtype),
            out_shape=(jax.ShapeDtypeStruct((N, C_pad), jnp.float32),
                       jax.ShapeDtypeStruct((N, D_pad), jnp.float32)),
            grid_spec=pltpu.PrefetchScalarGridSpec(
                num_scalar_prefetch=0,
                grid=(1,),
                in_specs=[pl.BlockSpec((N, D_pad), lambda i: (0, 0)),
                          pl.BlockSpec((1, D_pad), lambda i: (0, 0)),
                          pl.BlockSpec((1, D_pad), lambda i: (0, 0)),
                          pl.BlockSpec((D_pad, C_pad), lambda i: (0, 0))],
                out_specs=(pl.BlockSpec((N, C_pad), lambda i: (0, 0)),
                           pl.BlockSpec((N, D_pad), lambda i: (0, 0)))),
            compiler_params=pltpu.CompilerParams(
                dimension_semantics=("arbitrary",),
                vmem_limit_bytes=_VMEM_LIMIT),
            cost_estimate=pl.CostEstimate(
                flops=int(2 * N * D_pad * C_pad + 8 * N * D_pad),
                transcendentals=0,
                bytes_accessed=int(x_isz * N * D_pad + 4 * N * (D_pad + C_pad)
                                   + mm_isz * D_pad * C_pad)),
        )(x_p, g_p, b_p, w_p)
        return cls_p[:, :C], feat_p[:, :D]

    # ---------------- two-pass path (x streamed, read once per pass) ------
    # Pass 1: batch sum / sum-of-squares, large streaming tiles, 2-core split.
    tile_ns = _choose_tile_n_stats(N, D, x_isz, _TILE_BUDGET)
    total_tiles = _cdiv(N, tile_ns)
    n_cores = 2
    tiles_per_core = _cdiv(total_tiles, n_cores)

    def x_stats_index(c, i):
        t = c * tiles_per_core + i
        return (jnp.minimum(t, total_tiles - 1), 0)   # clamp; kernel masks dup rows

    part_sum, part_sumsq = pl.pallas_call(
        functools.partial(_stats_kernel, n_total=N, tile_n=tile_ns,
                          tiles_per_core=tiles_per_core),
        out_shape=(jax.ShapeDtypeStruct((n_cores, D), jnp.float32),
                   jax.ShapeDtypeStruct((n_cores, D), jnp.float32)),
        grid_spec=pltpu.PrefetchScalarGridSpec(
            num_scalar_prefetch=0,
            grid=(n_cores, tiles_per_core),
            in_specs=[pl.BlockSpec((tile_ns, D), x_stats_index)],
            out_specs=(pl.BlockSpec((1, D), lambda c, i: (c, 0)),
                       pl.BlockSpec((1, D), lambda c, i: (c, 0)))),
        compiler_params=pltpu.CompilerParams(
            dimension_semantics=("parallel", "arbitrary"),
            vmem_limit_bytes=_VMEM_LIMIT),
    )(x)

    # Tiny [1, D] statistics / weight-folding math stays in XLA.
    # TODO(synk): sum/sumsq variance can cancel for very large feature means;
    # the fused path uses the (x-mean)^2 formulation instead.
    x_sum = jnp.sum(part_sum, axis=0, keepdims=True)
    x_sumsq = jnp.sum(part_sumsq, axis=0, keepdims=True)
    mean = x_sum / N
    var = jnp.maximum(x_sumsq / N - mean * mean, 0.0)     # biased batch variance
    inv_std = jax.lax.rsqrt(var + EPS)
    scale = inv_std * gamma                                # fold gamma
    shift = beta - mean * scale

    w_t = jnp.zeros((D, C_pad), jnp.float32).at[:, :C].set(w.T.astype(jnp.float32))
    w_scaled = (scale[0][:, None] * w_t).astype(mm_dtype)  # fold BN into weights
    bias_row = shift @ w_t                                  # [1, C_pad], f32

    # Pass 2: normalize + folded matmul, N-tiled / auto-pipelined.
    tile_n = _choose_tile_n_main(N, D, C_pad, x_isz, mm_isz, _TILE_BUDGET)
    n_tiles = _cdiv(N, tile_n)

    flops = 2 * N * D * C_pad + 5 * N * D
    bytes_accessed = (x_isz * N * D + 4 * (N * D + N * C_pad)
                      + mm_isz * D * C_pad + 4 * (3 * D + C_pad))

    cls_p, feat = pl.pallas_call(
        functools.partial(_bn_linear_kernel, mm_dtype=mm_dtype),
        out_shape=(jax.ShapeDtypeStruct((N, C_pad), jnp.float32),
                   jax.ShapeDtypeStruct((N, D), jnp.float32)),
        grid_spec=pltpu.PrefetchScalarGridSpec(
            num_scalar_prefetch=0,
            grid=(n_tiles,),
            in_specs=[pl.BlockSpec((tile_n, D), lambda i: (i, 0)),
                      pl.BlockSpec((1, D), lambda i: (0, 0)),
                      pl.BlockSpec((1, D), lambda i: (0, 0)),
                      pl.BlockSpec((1, D), lambda i: (0, 0)),
                      pl.BlockSpec((D, C_pad), lambda i: (0, 0)),
                      pl.BlockSpec((1, C_pad), lambda i: (0, 0))],
            out_specs=(pl.BlockSpec((tile_n, C_pad), lambda i: (i, 0)),
                       pl.BlockSpec((tile_n, D), lambda i: (i, 0)))),
        compiler_params=pltpu.CompilerParams(
            dimension_semantics=("parallel",),
            vmem_limit_bytes=_VMEM_LIMIT),
        cost_estimate=pl.CostEstimate(flops=int(flops), transcendentals=0,
                                      bytes_accessed=int(bytes_accessed)),
    )(x, mean, scale, beta, w_scaled, bias_row)

    return cls_p[:, :C], feat


def reference_forward(x, gamma, beta, w):
    mean = jnp.mean(x, axis=0, keepdims=True)
    var = jnp.mean((x - mean) ** 2, axis=0, keepdims=True)
    feat = (x - mean) * jax.lax.rsqrt(var + EPS) * jnp.reshape(gamma, (1, -1)) \
        + jnp.reshape(beta, (1, -1))
    return feat @ w.T, feat


if __name__ == "__main__":
    # Small shapes consistent with the module: batch=8, in_dim=32, num_class=16.
    N, D, C = 8, 32, 16

    key = jax.random.PRNGKey(0)
    kx, kg, kw = jax.random.split(key, 3)

    x = jax.random.normal(kx, (N, D), dtype=jnp.float32)

    # weights_init_kaiming for BN: weight ~ N(1.0, 0.02), bias = 0 (frozen).
    gamma = 1.0 + 0.02 * jax.random.normal(kg, (D,), dtype=jnp.float32)
    beta = jnp.zeros((D,), dtype=jnp.float32)

    # weights_init_classifier: weight ~ N(0, 0.001), shape [num_class, in_dim].
    w = 0.001 * jax.random.normal(kw, (C, D), dtype=jnp.float32)

    ref_cls, ref_feat = reference_forward(x, gamma, beta, w)

    # Fused (x resident in VMEM) path — the one selected automatically here.
    cls_score, feat_after_bn = classifier_forward(x, gamma, beta, w)
    jax.block_until_ready((cls_score, feat_after_bn))
    assert cls_score.shape == (N, C) and feat_after_bn.shape == (N, D)
    assert jnp.allclose(cls_score, ref_cls, atol=1e-5, rtol=1e-5)
    assert jnp.allclose(feat_after_bn, ref_feat, atol=1e-5, rtol=1e-5)

    # Two-pass streaming path (used for large N) — exercised explicitly so both
    # code paths are compiled and verified.
    cls2, feat2 = classifier_forward(x, gamma, beta, w, force_two_pass=True)
    jax.block_until_ready((cls2, feat2))
    assert jnp.allclose(cls2, ref_cls, atol=1e-5, rtol=1e-5)
    assert jnp.allclose(feat2, ref_feat, atol=1e-5, rtol=1e-5)

    print("KERNEL_OK")
</pallas_src>

<mosaic_0001>
module attributes {stable_mosaic.version = 11 : i64} {
  func.func @_fused_kernel(%arg0: i32, %arg1: memref<8x128xf32, #tpu.memory_space<vmem>>, %arg2: memref<1x128xf32, #tpu.memory_space<vmem>>, %arg3: memref<1x128xf32, #tpu.memory_space<vmem>>, %arg4: memref<128x128xf32, #tpu.memory_space<vmem>>, %arg5: memref<8x128xf32, #tpu.memory_space<vmem>>, %arg6: memref<8x128xf32, #tpu.memory_space<vmem>>) attributes {dimension_semantics = [#tpu.dimension_semantics<arbitrary>], iteration_bounds = array<i64: 1>, scalar_prefetch = 0 : i64, scratch_operands = 0 : i64, tpu.core_type = #tpu.core_type<tc>, window_params = [{pipeline_mode = #tpu.pipeline_mode<synchronous>, transform_indices = @transform_0, window_bounds = array<i64: 8, 128>}, {pipeline_mode = #tpu.pipeline_mode<synchronous>, transform_indices = @transform_1, window_bounds = array<i64: 1, 128>}, {pipeline_mode = #tpu.pipeline_mode<synchronous>, transform_indices = @transform_2, window_bounds = array<i64: 1, 128>}, {pipeline_mode = #tpu.pipeline_mode<synchronous>, transform_indices = @transform_3, window_bounds = array<i64: 128, 128>}, {pipeline_mode = #tpu.pipeline_mode<synchronous>, transform_indices = @transform_4, window_bounds = array<i64: 8, 128>}, {pipeline_mode = #tpu.pipeline_mode<synchronous>, transform_indices = @transform_5, window_bounds = array<i64: 8, 128>}]} {
    %c0 = arith.constant 0 : index
    %c0_0 = arith.constant 0 : index
    %0 = vector.load %arg1[%c0, %c0_0] : memref<8x128xf32, #tpu.memory_space<vmem>>, vector<8x128xf32>
    %cst = arith.constant dense<0.000000e+00> : vector<128xf32>
    %1 = vector.multi_reduction <add>, %0, %cst [0] : vector<8x128xf32> to vector<128xf32>
    %2 = vector.shape_cast %1 : vector<128xf32> to vector<1x128xf32>
    %cst_1 = arith.constant 8.000000e+00 : f32
    %3 = vector.broadcast %cst_1 : f32 to vector<1x128xf32>
    %4 = arith.divf %2, %3 : vector<1x128xf32>
    %5 = vector.broadcast %4 : vector<1x128xf32> to vector<8x128xf32>
    %6 = arith.subf %0, %5 : vector<8x128xf32>
    %7 = arith.mulf %6, %6 : vector<8x128xf32>
    %cst_2 = arith.constant dense<0.000000e+00> : vector<128xf32>
    %8 = vector.multi_reduction <add>, %7, %cst_2 [0] : vector<8x128xf32> to vector<128xf32>
    %9 = vector.shape_cast %8 : vector<128xf32> to vector<1x128xf32>
    %cst_3 = arith.constant 8.000000e+00 : f32
    %10 = vector.broadcast %cst_3 : f32 to vector<1x128xf32>
    %11 = arith.divf %9, %10 : vector<1x128xf32>
    %cst_4 = arith.constant 9.99999974E-6 : f32
    %12 = vector.broadcast %cst_4 : f32 to vector<1x128xf32>
    %13 = arith.addf %11, %12 : vector<1x128xf32>
    %14 = math.rsqrt %13 : vector<1x128xf32>
    %c0_5 = arith.constant 0 : index
    %c0_6 = arith.constant 0 : index
    %15 = vector.load %arg2[%c0_5, %c0_6] : memref<1x128xf32, #tpu.memory_space<vmem>>, vector<1x128xf32>
    %16 = arith.mulf %14, %15 : vector<1x128xf32>
    %17 = vector.broadcast %16 : vector<1x128xf32> to vector<8x128xf32>
    %18 = arith.mulf %6, %17 : vector<8x128xf32>
    %c0_7 = arith.constant 0 : index
    %c0_8 = arith.constant 0 : index
    %19 = vector.load %arg3[%c0_7, %c0_8] : memref<1x128xf32, #tpu.memory_space<vmem>>, vector<1x128xf32>
    %20 = vector.broadcast %19 : vector<1x128xf32> to vector<8x128xf32>
    %21 = arith.addf %18, %20 : vector<8x128xf32>
    %c0_9 = arith.constant 0 : index
    %c0_10 = arith.constant 0 : index
    %22 = vector.load %arg6[%c0_9, %c0_10] : memref<8x128xf32, #tpu.memory_space<vmem>>, vector<8x128xf32>
    tpu.vector_store %arg6[%c0_9, %c0_10], %21 {strides = array<i32>} : memref<8x128xf32, #tpu.memory_space<vmem>>, vector<8x128xf32>,
    %c0_11 = arith.constant 0 : index
    %c0_12 = arith.constant 0 : index
    %23 = vector.load %arg4[%c0_11, %c0_12] : memref<128x128xf32, #tpu.memory_space<vmem>>, vector<128x128xf32>
    %cst_13 = arith.constant dense<0.000000e+00> : vector<8x128xf32>
    %24 = tpu.matmul %21, %23, %cst_13 {dimension_numbers = #tpu.dot_dimension_numbers<[1], [0], [0], [1], [0, 0, 1, 1], [], []>} : vector<8x128xf32>, vector<128x128xf32>, vector<8x128xf32> -> vector<8x128xf32>
    %c0_14 = arith.constant 0 : index
    %c0_15 = arith.constant 0 : index
    %25 = vector.load %arg5[%c0_14, %c0_15] : memref<8x128xf32, #tpu.memory_space<vmem>>, vector<8x128xf32>
    tpu.vector_store %arg5[%c0_14, %c0_15], %24 {strides = array<i32>} : memref<8x128xf32, #tpu.memory_space<vmem>>, vector<8x128xf32>,
    return
  }
  func.func @transform_0(%arg0: i32) -> (i32, i32) {
    %c0_i32 = arith.constant 0 : i32
    %c0_i32_0 = arith.constant 0 : i32
    %c0_i32_1 = arith.constant 0 : i32
    return %c0_i32, %c0_i32_0 : i32, i32
  }
  func.func @transform_1(%arg0: i32) -> (i32, i32) {
    %c0_i32 = arith.constant 0 : i32
    %c0_i32_0 = arith.constant 0 : i32
    %c0_i32_1 = arith.constant 0 : i32
    return %c0_i32, %c0_i32_0 : i32, i32
  }
  func.func @transform_2(%arg0: i32) -> (i32, i32) {
    %c0_i32 = arith.constant 0 : i32
    %c0_i32_0 = arith.constant 0 : i32
    %c0_i32_1 = arith.constant 0 : i32
    return %c0_i32, %c0_i32_0 : i32, i32
  }
  func.func @transform_3(%arg0: i32) -> (i32, i32) {
    %c0_i32 = arith.constant 0 : i32
    %c0_i32_0 = arith.constant 0 : i32
    %c0_i32_1 = arith.constant 0 : i32
    return %c0_i32, %c0_i32_0 : i32, i32
  }
  func.func @transform_4(%arg0: i32) -> (i32, i32) {
    %c0_i32 = arith.constant 0 : i32
    %c0_i32_0 = arith.constant 0 : i32
    %c0_i32_1 = arith.constant 0 : i32
    return %c0_i32, %c0_i32_0 : i32, i32
  }
  func.func @transform_5(%arg0: i32) -> (i32, i32) {
    %c0_i32 = arith.constant 0 : i32
    %c0_i32_0 = arith.constant 0 : i32
    %c0_i32_1 = arith.constant 0 : i32
    return %c0_i32, %c0_i32_0 : i32, i32
  }
}

</mosaic_0001>

<bundles_post_ra>
// kernel: classifier_forward.1
= control target key start
LH: loop header
LB: loop body
LE: loop exit
PB: predicated region body
PF: predicated region fallthrough
CT: control target
= control target key end

     0   :  { %11 = vsyncpa [#allocation3], 0  ;;  %v275_v1 = vmov 0.0   ;;  %vm276_vm0 = vmmov 0   ;;  %s389_s0 = inlined_call_operand.vmem [shape: f32[8,128], index: 0, kind: input, shape index: {}]   ;;  %s390_s1 = inlined_call_operand.vmem [shape: f32[1,128], index: 1, kind: input, shape index: {}]   ;;  %s391_s2 = inlined_call_operand.vmem [shape: f32[1,128], index: 2, kind: input, shape index: {}]   ;;  %s392_s3 = inlined_call_operand.vmem [shape: f32[128,128], index: 3, kind: input, shape index: {}]   ;;  %s393_s4 = inlined_call_operand.hbm [shape: f32[8,128], index: 4, kind: output, shape index: {0}]   ;;  %s394_s5 = inlined_call_operand.hbm [shape: f32[8,128], index: 5, kind: output, shape index: {1}]  }
   0x1   :  { %v72_v0 = vld [vmem:[%s392_s3 + $0x78] sm:$0xff]  ;;  %190 = vmatprep.subr.mxu0 %v275_v1  ;;  %v71_v2 = vld [vmem:[%s392_s3 + $0x70] sm:$0xff]  ;;  %222 = vmatprep.mubr.msk.f32.mxu0 %vm276_vm0, %v275_v1  ;;  %v70_v3 = vld [vmem:[%s392_s3 + $0x68] sm:$0xff] }
   0x2   :  { %191 = vmatpush3.msra.mxu0 %v72_v0  ;;  %v69_v4 = vld [vmem:[%s392_s3 + $0x60] sm:$0xff] }
   0x3   :  { %192 = vmatprep.subr.mxu0 %v275_v1  ;;  %v21_v5 = vld [vmem:[%s389_s0] sm:$0xff] }
   0x4   :  { %193 = vmatpush3.msra.mxu0 %v71_v2  ;;  %v22_v6 = vrot.slane %v21_v5, 4 }
   0x5   :  { %194 = vmatprep.subr.mxu0 %v275_v1 }
   0x6   :  { %195 = vmatpush3.msra.mxu0 %v70_v3 }
   0x7   :  { %12 = vsyncpa [#allocation5], 0  ;;  %196 = vmatprep.subr.mxu0 %v275_v1  ;;  %v68_v7 = vld [vmem:[%s392_s3 + $0x58] sm:$0xff]  ;;  %v23_v8 = vadd.f32 %v22_v6, %v21_v5  ;;  %v67_v9 = vld [vmem:[%s392_s3 + $0x50] sm:$0xff]  ;;  %v43_v35 = vlaneseq  ;;  %s277_s29 = smov [#allocation4]  }
   0x8   :  { %197 = vmatpush3.msra.mxu0 %v69_v4  ;;  %v66_v11 = vld [vmem:[%s392_s3 + $0x48] sm:$0xff]  ;;  %v65_v13 = vld [vmem:[%s392_s3 + $0x40] sm:$0xff]  ;;  %v64_v15 = vld [vmem:[%s392_s3 + $0x38] sm:$0xff]  ;;  %s160_s30 = sshll.u32 %s277_s29, 4  ;;  %s161_s30 = int_to_ptr.vmem [resolvable:$true] %s160_s30 }
   0x9   :  { %198 = vmatprep.subr.mxu0 %v275_v1  ;;  %v24_v10 = vrot.slane %v23_v8, 2  ;;  %v63_v17 = vld [vmem:[%s392_s3 + $0x30] sm:$0xff]  ;;  %v62_v19 = vld [vmem:[%s392_s3 + $0x28] sm:$0xff]  ;;  %v61_v21 = vld [vmem:[%s392_s3 + $0x20] sm:$0xff]  ;;  %v44_v36 = vshrl.u32 %v43_v35, 7  ;;  %s231_s6 = scalar_lea.vmem %s161_s30, 128  ;;  %p236_p1 = scmp.lt.s32.totalorder %s161_s30, %s161_s30 }
   0xa   :  { %199 = vmatpush3.msra.mxu0 %v68_v7  ;;  %v60_v23 = vld [vmem:[%s392_s3 + $0x18] sm:$0xff]  ;;  %v59_v25 = vld [vmem:[%s392_s3 + $0x10] sm:$0xff]  ;;  %v58_v27 = vld [vmem:[%s392_s3 + $0x8] sm:$0xff]  ;;  %p232_p0 = scmp.ne.s32.totalorder %s161_s30, %s231_s6  ;;  %p237_p2 = scmp.lt.s32.totalorder %s231_s6, %s231_s6 }
   0xb   :  { %200 = vmatprep.subr.mxu0 %v275_v1  ;;  %v25_v12 = vadd.f32 %v24_v10, %v23_v8  ;;  %v57_v29 = vld [vmem:[%s392_s3] sm:$0xff]  ;;  %v45_v38 = vsub.s32 0, %v44_v36 }
   0xc   :  { %201 = vmatpush3.msra.mxu0 %v67_v9  ;;  %v41_v37 = vld [vmem:[%s390_s1] sm:$0x1]  ;;  %p238_p3 = por %p237_p2, %p236_p1 }
   0xd   :  { %202 = vmatprep.subr.mxu0 %v275_v1  ;;  %v26_v14 = vrot.slane %v25_v12, 1  ;;  %v172_v42 = vld [vmem:[%s391_s2] ss:$0 sm:$0xff] }
   0xe   :  { %203 = vmatpush3.msra.mxu0 %v66_v11  ;;  %p239_p4 = pnand %p238_p3, %p232_p0 }
   0xf   :  { %204 = vmatprep.subr.mxu0 %v275_v1  ;;  %v27_v16 = vadd.f32 %v26_v14, %v25_v12 }
  0x10   :  { %205 = vmatpush3.msra.mxu0 %v65_v13 }
  0x11   :  { %206 = vmatprep.subr.mxu0 %v275_v1  ;;  %v29_v18 = vmul.f32 0.125, %v27_v16 }
  0x12   :  { %207 = vmatpush3.msra.mxu0 %v64_v15 }
  0x13   :  { %208 = vmatprep.subr.mxu0 %v275_v1  ;;  %v30_v20 = vsub.f32 %v21_v5, %v29_v18 }
  0x14   :  { %209 = vmatpush3.msra.mxu0 %v63_v17 }
  0x15   :  { %210 = vmatprep.subr.mxu0 %v275_v1  ;;  %v31_v22 = vmul.f32 %v30_v20, %v30_v20 }
  0x16   :  { %211 = vmatpush3.msra.mxu0 %v62_v19 }
  0x17   :  { %212 = vmatprep.subr.mxu0 %v275_v1  ;;  %v32_v24 = vrot.slane %v31_v22, 4 }
  0x18   :  { %213 = vmatpush3.msra.mxu0 %v61_v21 }
  0x19   :  { %214 = vmatprep.subr.mxu0 %v275_v1  ;;  %v33_v26 = vadd.f32 %v32_v24, %v31_v22 }
  0x1a   :  { %215 = vmatpush3.msra.mxu0 %v60_v23 }
  0x1b   :  { %216 = vmatprep.subr.mxu0 %v275_v1  ;;  %v34_v28 = vrot.slane %v33_v26, 2 }
  0x1c   :  { %217 = vmatpush3.msra.mxu0 %v59_v25 }
  0x1d   :  { %218 = vmatprep.subr.mxu0 %v275_v1  ;;  %v35_v30 = vadd.f32 %v34_v28, %v33_v26 }
  0x1e   :  { %219 = vmatpush3.msra.mxu0 %v58_v27 }
  0x1f   :  { %220 = vmatprep.subr.mxu0 %v275_v1  ;;  %v36_v31 = vrot.slane %v35_v30, 1 }
  0x20   :  { %221 = vmatpush3.msra.mxu0 %v57_v29 }
  0x21   :  { %v37_v32 = vadd.f32 %v36_v31, %v35_v30 }
  0x23   :  { %v38_v33 = vmul.f32 0.125, %v37_v32 }
  0x25   :  { %v39_v34 = vadd.f32 1e-05, %v38_v33 }
  0x27   :  { %229 = vrsqrt.f32 %v39_v34 }
  0x34   :  { %v230_v39 = vpop.eup %229 }
  0x35   :  { %v42_v40 = vmul.f32 %v230_v39, %v41_v37 }
  0x37   :  { %v46_v41 = vrot.slane %v42_v40, %v45_v38 }
  0x39   :  { %v47_v43 = vmul.f32 %v46_v41, %v30_v20 }
  0x3b   :  { %v55_v44 = vadd.f32 %v172_v42, %v47_v43 }
  0x3d   :  { %223 = vmatmul.mubr.f32.vlgmr.msra.gmra.mxu0 %v55_v44  ;;  %56 = vst [vmem:[#allocation4] sm:$0xff] %v55_v44 }
  0x3e   :  { %242 = shalt.err (!%p239_p4)
}
  0x3f   :  { %163 = dma.vmem_to_hbm [thread:$0]  %s161_s30, 128, %s394_s5, [#allocation5]  }
  0x40   :  { %s278_s7 = smov [#allocation2]  }
  0x41   :  { %s150_s2 = sshll.u32 %s278_s7, 4  ;;  %s151_s2 = int_to_ptr.vmem [resolvable:$true] %s150_s2 }
  0x42   :  { %s251_s8 = scalar_lea.vmem %s151_s2, 128  ;;  %p256_p6 = scmp.lt.s32.totalorder %s151_s2, %s151_s2 }
  0x43   :  { %p252_p5 = scmp.ne.s32.totalorder %s151_s2, %s251_s8  ;;  %p257_p7 = scmp.lt.s32.totalorder %s251_s8, %s251_s8 }
  0x45   :  { %p258_p8 = por %p257_p7, %p256_p6 }
  0x47   :  { %p259_p9 = pnand %p258_p8, %p252_p5 }
  0xfd   :  { %v139_v45 = vpop.f32.mrf.mxu0 }
  0xfe   :  { %143 = vst [vmem:[#allocation2] sm:$0xff] %v139_v45 }
  0xff   :  { %v224_v46 = vpop.f32.mrf.mxu0 }
 0x100   :  { %262 = shalt.err (!%p259_p9)
}
 0x101   :  { %153 = dma.vmem_to_hbm [thread:$0]  %s151_s2, 128, %s393_s4, [#allocation3]  }
 0x102   :  { %271 = dma.done.wait [#allocation3], 128  }
 0x103   :  { %272 = vsyncadd [#allocation3], 4294967168 }
 0x104   :  { %273 = dma.done.wait [#allocation5], 128  }
 0x105   :  { %274 = vsyncadd [#allocation5], 4294967168 }
 0x106   :  { %170 = vsyncpa [#allocation3], 1 }
 0x107   :  { %171 = vsyncpa [#allocation5], 1 }

</bundles_post_ra>
